<compile_context>
chip_gen: v7x
topology: tpu7x:2x2x1
jax: 0.10.0
libtpu: 0.0.40
codegen_flags: <defaults>
</compile_context>

<pallas_src>
import jax
import jax.numpy as jnp
import numpy as np
from jax.experimental import pallas as pl
from jax.experimental.pallas import tpu as pltpu


def _make_kernel(rm, rn):
    """Kernel closure over the (static) per-operand row counts."""
    mo = 5 * rm  # rows used by the five M-side operands

    def pair_loss_kernel(slab_ref, out_ref):
        f32 = jnp.float32

        # Static row slices of the single packed slab (views -> direct loads).
        pred1 = slab_ref[0 * rm:1 * rm, :]
        t1 = slab_ref[1 * rm:2 * rm, :]
        p2g = slab_ref[2 * rm:3 * rm, :]
        t2g = slab_ref[3 * rm:4 * rm, :]
        msk = slab_ref[4 * rm:5 * rm, :]
        pred2 = slab_ref[mo + 0 * rn:mo + 1 * rn, :]
        t2 = slab_ref[mo + 1 * rn:mo + 2 * rn, :]
        cro = slab_ref[mo + 2 * rn:mo + 3 * rn, :]

        # ---- delta / weight (VPU + one EUP exp) ----
        abs_d1 = jnp.abs(pred1 - t1)
        abs_d2 = jnp.abs(p2g - t2g)
        delta = (abs_d1 + abs_d2) / (jnp.abs(t1) + 0.0001)
        delta = delta * delta
        delta = jnp.minimum(delta, 1.0)          # == delta*mask + (1-mask) in torch
        weight = 1.0 - jnp.exp(-3.14 * delta)
        # Invariant: mask >= 0 and weight >= 0, therefore
        #   |a*mask*weight - b*mask*weight| == |a - b| * mask * weight.
        # If the weight formula ever admits negatives this reuse breaks.
        mw = msk * weight

        # ---- masked L1 sums ----
        l1 = jnp.sum(abs_d1 * mw, keepdims=True)      # (1, 1)
        l2 = jnp.sum(abs_d2 * mw, keepdims=True)      # (1, 1)
        msum = jnp.sum(msk, keepdims=True)            # (1, 1)

        abs_d3 = jnp.abs(pred2 - t2)
        # Exact float equality, matching (target2==0).float() == mask_cro in torch
        # (assumes binary mask_cro; zero-padded lanes give big==False -> 0).
        big = (t2 == 0.0).astype(f32) == cro
        l3 = jnp.sum(jnp.where(big, abs_d3, 0.0), keepdims=True)

        inv = pl.reciprocal(msum + 0.0001, approx=True)   # EUP, free slot
        loss1 = l1 * inv
        loss23 = 0.5 * l2 * inv + 0.2 * l3 * inv

        # Single merged lane-dense output row: lane 0 = loss1, lane 1 = loss23.
        lane = jax.lax.broadcasted_iota(jnp.int32, (1, 128), 1)
        out_ref[...] = jnp.where(lane == 0, loss1,
                                 jnp.where(lane == 1, loss23, 0.0))

    return pair_loss_kernel


def pair_loss_pallas(output1, ind1, output2, ind2, mask, mask_cro,
                     ctr_cro_ind, target1, target2, hm_ctxy=None):
    # hm_ctxy is unused by the reference PyTorch forward; accepted and ignored.
    B, C, H, W = output1.shape
    HW = H * W
    M = ind1.shape[1]
    N = ind2.shape[1]
    assert C == 8, "PairLoss semantics require 8 channels (4 corner-pair offsets)"
    f32 = jnp.float32

    # ---- gathers on the (B, C, HW) view: never materialise (B, HW, C) ----
    # Note: jnp.take_along_axis clamps out-of-range indices (torch.gather errors).
    feat1 = output1.reshape(B, C, HW).astype(f32)
    feat2 = output2.reshape(B, C, HW).astype(f32)
    i1 = jnp.broadcast_to(ind1.astype(jnp.int32)[:, None, :], (B, C, M))
    i2 = jnp.broadcast_to(ind2.astype(jnp.int32)[:, None, :], (B, C, N))
    pred1 = jnp.transpose(jnp.take_along_axis(feat1, i1, axis=2), (0, 2, 1))  # (B, M, C)
    pred2 = jnp.transpose(jnp.take_along_axis(feat2, i2, axis=2), (0, 2, 1))  # (B, N, C)

    t1 = target1.astype(f32)
    t2 = target2.astype(f32)

    # ctr_cro_ind regroup: view(b,4n,2).gather(1, idx).view(b,m,8)
    idx = jnp.broadcast_to(ctr_cro_ind.astype(jnp.int32)[:, :, None], (B, 4 * M, 2))
    pred2_g = jnp.take_along_axis(pred2.reshape(B, 4 * N, 2), idx, axis=1).reshape(B, M, C)
    targ2_g = jnp.take_along_axis(t2.reshape(B, 4 * N, 2), idx, axis=1).reshape(B, M, C)

    # ---- pack everything into ONE lane-dense (k, 128) slab (single DMA) ----
    mask_e = jnp.broadcast_to(mask.astype(f32)[:, :, None], (B, M, C))
    cro_e = jnp.broadcast_to(mask_cro.astype(f32)[:, :, None], (B, N, C))

    Lm, Ln = B * M * C, B * N * C
    Rm, Rn = pl.cdiv(Lm, 128), pl.cdiv(Ln, 128)

    m_ops = jnp.stack([pred1, t1, pred2_g, targ2_g, mask_e], axis=0).reshape(5, Lm)
    m_ops = jnp.pad(m_ops, ((0, 0), (0, Rm * 128 - Lm)))          # zero pad is loss-neutral
    n_ops = jnp.stack([pred2, t2, cro_e], axis=0).reshape(3, Ln)
    n_ops = jnp.pad(n_ops, ((0, 0), (0, Rn * 128 - Ln)))
    slab = jnp.concatenate([m_ops.reshape(5 * Rm, 128),
                            n_ops.reshape(3 * Rn, 128)], axis=0)   # (5*Rm + 3*Rn, 128)

    cost = pl.CostEstimate(
        flops=16 * 5 * Rm * 128 + 6 * 3 * Rn * 128,
        transcendentals=Rm * 128,
        bytes_accessed=4 * ((5 * Rm + 3 * Rn) * 128 + 128),
    )

    out = pl.pallas_call(
        _make_kernel(int(Rm), int(Rn)),
        out_shape=jax.ShapeDtypeStruct((1, 128), jnp.float32),
        in_specs=[pl.BlockSpec(memory_space=pltpu.MemorySpace.VMEM)],
        out_specs=pl.BlockSpec(memory_space=pltpu.MemorySpace.VMEM),
        cost_estimate=cost,
    )(slab)

    return out[0, 0], out[0, 1]


def pair_loss_ref(output1, ind1, output2, ind2, mask, mask_cro,
                  ctr_cro_ind, target1, target2):
    """Pure-JAX mirror of the PyTorch forward, used for verification."""
    B, C, H, W = output1.shape
    HW = H * W
    M = ind1.shape[1]
    N = ind2.shape[1]
    feat1 = jnp.transpose(output1, (0, 2, 3, 1)).reshape(B, HW, C)
    feat2 = jnp.transpose(output2, (0, 2, 3, 1)).reshape(B, HW, C)
    pred1 = jnp.take_along_axis(feat1, jnp.broadcast_to(ind1[:, :, None], (B, M, C)), axis=1)
    pred2 = jnp.take_along_axis(feat2, jnp.broadcast_to(ind2[:, :, None], (B, N, C)), axis=1)
    pred2_tmp = pred2
    mask_f = jnp.broadcast_to(mask[:, :, None].astype(jnp.float32), (B, M, C))
    idx = jnp.broadcast_to(ctr_cro_ind[:, :, None], (B, 4 * M, 2))
    pred2_g = jnp.take_along_axis(pred2.reshape(B, 4 * N, 2), idx, axis=1).reshape(B, M, 8)
    t2_g = jnp.take_along_axis(target2.reshape(B, 4 * N, 2), idx, axis=1).reshape(B, M, 8)
    delta = (jnp.abs(pred1 - target1) + jnp.abs(pred2_g - t2_g)) / (jnp.abs(target1) + 0.0001)
    delta = delta * delta
    delta = jnp.where(delta > 1.0, 1.0, delta)
    weight = 1.0 - jnp.exp(-3.14 * delta)
    denom = mask_f.sum() + 0.0001
    loss1 = jnp.sum(jnp.abs(pred1 * mask_f * weight - target1 * mask_f * weight)) / denom
    loss2 = jnp.sum(jnp.abs(pred2_g * mask_f * weight - t2_g * mask_f * weight)) / denom
    mask1 = (target2 == 0).astype(jnp.float32)
    cro = jnp.broadcast_to(mask_cro[:, :, None].astype(jnp.float32), (B, N, 8))
    big_mask = (mask1 == cro).astype(jnp.float32)
    loss3 = jnp.sum(jnp.abs(pred2_tmp * big_mask - target2 * big_mask)) / denom
    return loss1, 0.5 * loss2 + 0.2 * loss3


if __name__ == "__main__":
    key = jax.random.PRNGKey(0)
    B, C, H, W, M, N = 2, 8, 16, 16, 8, 8
    ks = jax.random.split(key, 10)

    output1 = jax.random.normal(ks[0], (B, C, H, W), jnp.float32)
    output2 = jax.random.normal(ks[1], (B, C, H, W), jnp.float32)
    ind1 = jax.random.randint(ks[2], (B, M), 0, H * W, dtype=jnp.int32)
    ind2 = jax.random.randint(ks[3], (B, N), 0, H * W, dtype=jnp.int32)
    mask = jax.random.bernoulli(ks[4], 0.7, (B, M)).astype(jnp.float32)
    mask_cro = jax.random.bernoulli(ks[5], 0.5, (B, N)).astype(jnp.float32)
    ctr_cro_ind = jax.random.randint(ks[6], (B, 4 * M), 0, 4 * N, dtype=jnp.int32)
    target1 = jax.random.normal(ks[7], (B, M, C), jnp.float32)
    target2 = (jax.random.normal(ks[8], (B, N, C), jnp.float32)
               * jax.random.bernoulli(ks[9], 0.7, (B, N, C)).astype(jnp.float32))
    hm_ctxy = jnp.zeros((B, M, 4), jnp.float32)   # unused by the forward pass

    pair_loss_jit = jax.jit(pair_loss_pallas)
    loss1, loss23 = pair_loss_jit(output1, ind1, output2, ind2, mask, mask_cro,
                                  ctr_cro_ind, target1, target2, hm_ctxy)
    jax.block_until_ready((loss1, loss23))

    r1, r23 = pair_loss_ref(output1, ind1, output2, ind2, mask, mask_cro,
                            ctr_cro_ind, target1, target2)
    np.testing.assert_allclose(np.asarray(loss1), np.asarray(r1), rtol=2e-3, atol=2e-3)
    np.testing.assert_allclose(np.asarray(loss23), np.asarray(r23), rtol=2e-3, atol=2e-3)

    print("KERNEL_OK")
</pallas_src>

<mosaic_0001>
module attributes {stable_mosaic.version = 11 : i64} {
  func.func @pair_loss_kernel(%arg0: memref<8x128xf32, #tpu.memory_space<vmem>>, %arg1: memref<1x128xf32, #tpu.memory_space<vmem>>) attributes {dimension_semantics = [], scalar_prefetch = 0 : i64, scratch_operands = 0 : i64, tpu.core_type = #tpu.core_type<tc>} {
    %c0 = arith.constant 0 : index
    %c0_0 = arith.constant 0 : index
    %0 = vector.load %arg0[%c0, %c0_0] : memref<8x128xf32, #tpu.memory_space<vmem>>, vector<1x128xf32>
    %c1 = arith.constant 1 : index
    %c0_1 = arith.constant 0 : index
    %1 = vector.load %arg0[%c1, %c0_1] : memref<8x128xf32, #tpu.memory_space<vmem>>, vector<1x128xf32>
    %c2 = arith.constant 2 : index
    %c0_2 = arith.constant 0 : index
    %2 = vector.load %arg0[%c2, %c0_2] : memref<8x128xf32, #tpu.memory_space<vmem>>, vector<1x128xf32>
    %c3 = arith.constant 3 : index
    %c0_3 = arith.constant 0 : index
    %3 = vector.load %arg0[%c3, %c0_3] : memref<8x128xf32, #tpu.memory_space<vmem>>, vector<1x128xf32>
    %c4 = arith.constant 4 : index
    %c0_4 = arith.constant 0 : index
    %4 = vector.load %arg0[%c4, %c0_4] : memref<8x128xf32, #tpu.memory_space<vmem>>, vector<1x128xf32>
    %c5 = arith.constant 5 : index
    %c0_5 = arith.constant 0 : index
    %5 = vector.load %arg0[%c5, %c0_5] : memref<8x128xf32, #tpu.memory_space<vmem>>, vector<1x128xf32>
    %c6 = arith.constant 6 : index
    %c0_6 = arith.constant 0 : index
    %6 = vector.load %arg0[%c6, %c0_6] : memref<8x128xf32, #tpu.memory_space<vmem>>, vector<1x128xf32>
    %c7 = arith.constant 7 : index
    %c0_7 = arith.constant 0 : index
    %7 = vector.load %arg0[%c7, %c0_7] : memref<8x128xf32, #tpu.memory_space<vmem>>, vector<1x128xf32>
    %8 = arith.subf %0, %1 : vector<1x128xf32>
    %9 = math.absf %8 : vector<1x128xf32>
    %10 = arith.subf %2, %3 : vector<1x128xf32>
    %11 = math.absf %10 : vector<1x128xf32>
    %12 = arith.addf %9, %11 : vector<1x128xf32>
    %13 = math.absf %1 : vector<1x128xf32>
    %cst = arith.constant 9.99999974E-5 : f32
    %14 = vector.broadcast %cst : f32 to vector<1x128xf32>
    %15 = arith.addf %13, %14 : vector<1x128xf32>
    %16 = arith.divf %12, %15 : vector<1x128xf32>
    %17 = arith.mulf %16, %16 : vector<1x128xf32>
    %cst_8 = arith.constant 1.000000e+00 : f32
    %18 = vector.broadcast %cst_8 : f32 to vector<1x128xf32>
    %19 = arith.minimumf %17, %18 : vector<1x128xf32>
    %cst_9 = arith.constant -3.140000e+00 : f32
    %20 = vector.broadcast %cst_9 : f32 to vector<1x128xf32>
    %21 = arith.mulf %20, %19 : vector<1x128xf32>
    %22 = math.exp %21 : vector<1x128xf32>
    %cst_10 = arith.constant 1.000000e+00 : f32
    %23 = vector.broadcast %cst_10 : f32 to vector<1x128xf32>
    %24 = arith.subf %23, %22 : vector<1x128xf32>
    %25 = arith.mulf %4, %24 : vector<1x128xf32>
    %26 = arith.mulf %9, %25 : vector<1x128xf32>
    %27 = vector.shape_cast %26 : vector<1x128xf32> to vector<1x1x128xf32>
    %cst_11 = arith.constant dense<0.000000e+00> : vector<1xf32>
    %28 = vector.multi_reduction <add>, %27, %cst_11 [1, 2] : vector<1x1x128xf32> to vector<1xf32>
    %29 = vector.shape_cast %28 : vector<1xf32> to vector<1x1x1xf32>
    %30 = vector.extract %29[0, 0, 0] : f32 from vector<1x1x1xf32>
    %31 = vector.broadcast %30 : f32 to vector<1x1xf32>
    %32 = arith.mulf %11, %25 : vector<1x128xf32>
    %33 = vector.shape_cast %32 : vector<1x128xf32> to vector<1x1x128xf32>
    %cst_12 = arith.constant dense<0.000000e+00> : vector<1xf32>
    %34 = vector.multi_reduction <add>, %33, %cst_12 [1, 2] : vector<1x1x128xf32> to vector<1xf32>
    %35 = vector.shape_cast %34 : vector<1xf32> to vector<1x1x1xf32>
    %36 = vector.extract %35[0, 0, 0] : f32 from vector<1x1x1xf32>
    %37 = vector.broadcast %36 : f32 to vector<1x1xf32>
    %38 = vector.shape_cast %4 : vector<1x128xf32> to vector<1x1x128xf32>
    %cst_13 = arith.constant dense<0.000000e+00> : vector<1xf32>
    %39 = vector.multi_reduction <add>, %38, %cst_13 [1, 2] : vector<1x1x128xf32> to vector<1xf32>
    %40 = vector.shape_cast %39 : vector<1xf32> to vector<1x1x1xf32>
    %41 = vector.extract %40[0, 0, 0] : f32 from vector<1x1x1xf32>
    %42 = vector.broadcast %41 : f32 to vector<1x1xf32>
    %43 = arith.subf %5, %6 : vector<1x128xf32>
    %44 = math.absf %43 : vector<1x128xf32>
    %cst_14 = arith.constant 0.000000e+00 : f32
    %45 = vector.broadcast %cst_14 : f32 to vector<1x128xf32>
    %46 = arith.cmpf oeq, %6, %45 : vector<1x128xf32>
    %47 = arith.extui %46 : vector<1x128xi1> to vector<1x128xi32>
    %48 = arith.sitofp %47 : vector<1x128xi32> to vector<1x128xf32>
    %49 = arith.cmpf oeq, %48, %7 : vector<1x128xf32>
    %cst_15 = arith.constant 0.000000e+00 : f32
    %50 = vector.broadcast %cst_15 : f32 to vector<1x128xf32>
    %51 = arith.select %49, %44, %50 : vector<1x128xi1>, vector<1x128xf32>
    %52 = vector.shape_cast %51 : vector<1x128xf32> to vector<1x1x128xf32>
    %cst_16 = arith.constant dense<0.000000e+00> : vector<1xf32>
    %53 = vector.multi_reduction <add>, %52, %cst_16 [1, 2] : vector<1x1x128xf32> to vector<1xf32>
    %54 = vector.shape_cast %53 : vector<1xf32> to vector<1x1x1xf32>
    %55 = vector.extract %54[0, 0, 0] : f32 from vector<1x1x1xf32>
    %56 = vector.broadcast %55 : f32 to vector<1x1xf32>
    %cst_17 = arith.constant 9.99999974E-5 : f32
    %57 = vector.broadcast %cst_17 : f32 to vector<1x1xf32>
    %58 = arith.addf %42, %57 : vector<1x1xf32>
    %59 = tpu.reciprocal %58 {approx = true} : vector<1x1xf32> -> vector<1x1xf32>
    %60 = arith.mulf %31, %59 : vector<1x1xf32>
    %cst_18 = arith.constant 5.000000e-01 : f32
    %61 = vector.broadcast %cst_18 : f32 to vector<1x1xf32>
    %62 = arith.mulf %61, %37 : vector<1x1xf32>
    %63 = arith.mulf %62, %59 : vector<1x1xf32>
    %cst_19 = arith.constant 2.000000e-01 : f32
    %64 = vector.broadcast %cst_19 : f32 to vector<1x1xf32>
    %65 = arith.mulf %64, %56 : vector<1x1xf32>
    %66 = arith.mulf %65, %59 : vector<1x1xf32>
    %67 = arith.addf %63, %66 : vector<1x1xf32>
    %68 = tpu.iota {dimensions = array<i32: 1>} : vector<1x128xi32>
    %c0_i32 = arith.constant 0 : i32
    %69 = vector.broadcast %c0_i32 : i32 to vector<1x128xi32>
    %70 = arith.cmpi eq, %68, %69 : vector<1x128xi32>
    %c1_i32 = arith.constant 1 : i32
    %71 = vector.broadcast %c1_i32 : i32 to vector<1x128xi32>
    %72 = arith.cmpi eq, %68, %71 : vector<1x128xi32>
    %cst_20 = arith.constant 0.000000e+00 : f32
    %73 = vector.shape_cast %67 : vector<1x1xf32> to vector<1x1xf32>
    %74 = vector.broadcast %73 : vector<1x1xf32> to vector<1x128xf32>
    %75 = vector.broadcast %cst_20 : f32 to vector<1x128xf32>
    %76 = arith.select %72, %74, %75 : vector<1x128xi1>, vector<1x128xf32>
    %77 = vector.shape_cast %60 : vector<1x1xf32> to vector<1x1xf32>
    %78 = vector.broadcast %77 : vector<1x1xf32> to vector<1x128xf32>
    %79 = arith.select %70, %78, %76 : vector<1x128xi1>, vector<1x128xf32>
    %c0_21 = arith.constant 0 : index
    %c0_22 = arith.constant 0 : index
    %80 = vector.load %arg1[%c0_21, %c0_22] : memref<1x128xf32, #tpu.memory_space<vmem>>, vector<1x128xf32>
    tpu.vector_store %arg1[%c0_21, %c0_22], %79 {strides = array<i32>} : memref<1x128xf32, #tpu.memory_space<vmem>>, vector<1x128xf32>,
    return
  }
}

</mosaic_0001>

<bundles_post_ra>
// kernel: pair_loss_pallas.1
= control target key start
LH: loop header
LB: loop body
LE: loop exit
PB: predicated region body
PF: predicated region fallthrough
CT: control target
= control target key end

     0   :  { %vm33_vm0 = vcmask 1040384   ;;  %v121_v12 = vmov 0.0   ;;  %s163_s0 = inlined_call_operand.vmem [shape: f32[8,128], index: 0, kind: input, shape index: {}]   ;;  %s164_s1 = inlined_call_operand.vmem [shape: f32[1,128], index: 1, kind: output, shape index: {}]  }
   0x1   :  { %v12_v0 = vld [vmem:[%s163_s0 + $0x4] sm:$0x1]  ;;  %v8_v1 = vld [vmem:[%s163_s0] sm:$0x1]  ;;  %v9_v2 = vld [vmem:[%s163_s0 + $0x1] sm:$0x1] }
   0x2   :  { %v57_v3 = vsel %vm33_vm0, %v12_v0, 0.0  ;;  %v10_v4 = vld [vmem:[%s163_s0 + $0x2] sm:$0x1]  ;;  %v11_v5 = vld [vmem:[%s163_s0 + $0x3] sm:$0x1]  ;;  %v16_v14 = vsub.f32 %v8_v1, %v9_v2  ;;  %v94_v1 = vlaneseq }
   0x3   :  { %58 = vadd.xlane.f32.xlu1 %v57_v3  ;;  %v21_v6 = vand.u32 2147483647, %v9_v2  ;;  %v13_v7 = vld [vmem:[%s163_s0 + $0x5] sm:$0x1]  ;;  %v14_v8 = vld [vmem:[%s163_s0 + $0x6] sm:$0x1]  ;;  %v18_v15 = vsub.f32 %v10_v4, %v11_v5 }
   0x4   :  { %v15_v9 = vld [vmem:[%s163_s0 + $0x7] sm:$0x1]  ;;  %v68_v10 = vsub.f32 %v13_v7, %v14_v8  ;;  %vm70_vm1 = vcmp.eq.f32.partialorder %v14_v8, 0.0  ;;  %v17_v19 = vand.u32 2147483647, %v16_v14  ;;  %v95_v4 = vand.u32 127, %v94_v1 }
   0x5   :  { %v22_v11 = vadd.f32 0.0001, %v21_v6  ;;  %v105_v13 = vsel %vm70_vm1, 1.0, %v121_v12  ;;  %v19_v20 = vand.u32 2147483647, %v18_v15 }
   0x6   :  { %v69_v16 = vand.u32 2147483647, %v68_v10  ;;  %vm73_vm2 = vcmp.eq.f32.partialorder %v105_v13, %v15_v9  ;;  %vm97_vm3 = vcmp.eq.s32.totalorder %v95_v4, 1  ;;  %vm96_vm4 = vcmp.eq.s32.totalorder %v95_v4, 0 }
   0x7   :  { %115 = vrcp.f32 %v22_v11  ;;  %v20_v21 = vadd.f32 %v19_v20, %v17_v19 }
   0x8   :  { %v74_v17 = vsel %vm73_vm2, %v69_v16, 0.0 }
   0x9   :  { %v75_v18 = vsel %vm33_vm0, %v74_v17, 0.0 }
   0xa   :  { %76 = vadd.xlane.f32.xlu1 %v75_v18 }
  0x11   :  { %v116_v22 = vpop.eup %115 }
  0x12   :  { %v24_v23 = vmul.f32 %v116_v22, %v20_v21 }
  0x14   :  { %v25_v24 = vmul.f32 %v24_v23, %v24_v23 }
  0x16   :  { %v26_v25 = vmin.f32 %v25_v24, 1.0 }
  0x18   :  { %v27_v26 = vmul.f32 -3.14, %v26_v25 }
  0x1a   :  { %v28_v27 = vmul.f32 1.442695, %v27_v26 }
  0x1c   :  { %117 = vpow2.f32 %v28_v27 }
  0x26   :  { %v118_v28 = vpop.eup %117 }
  0x27   :  { %v30_v29 = vsub.f32 1.0, %v118_v28 }
  0x29   :  { %v31_v30 = vmul.f32 %v30_v29, %v12_v0 }
  0x2b   :  { %v32_v31 = vmul.f32 %v31_v30, %v17_v19  ;;  %v45_v32 = vmul.f32 %v31_v30, %v19_v20 }
  0x2d   :  { %v34_v33 = vsel %vm33_vm0, %v32_v31, 0.0  ;;  %v46_v34 = vsel %vm33_vm0, %v45_v32, 0.0 }
  0x2e   :  { %35 = vadd.xlane.f32.xlu0 %v34_v33 }
  0x32   :  { %47 = vadd.xlane.f32.xlu0 %v46_v34 }
  0x90   :  { %v59_v35 = vpop.xlane.xlu1 %58 }
  0x91   :  { %v60_v38 = vrot.slane %v59_v35, 4 }
  0x93   :  { %v61_v40 = vadd.f32 %v60_v38, %v59_v35 }
  0x95   :  { %v62_v45 = vrot.slane %v61_v40, 2 }
  0x97   :  { %v77_v36 = vpop.xlane.xlu1 %76  ;;  %v63_v52 = vadd.f32 %v62_v45, %v61_v40 }
  0x98   :  { %v78_v37 = vrot.slane %v77_v36, 4 }
  0x99   :  { %v64_v58 = vrot.slane %v63_v52, 1 }
  0x9a   :  { %v79_v39 = vadd.f32 %v78_v37, %v77_v36 }
  0x9b   :  { %v65_v62 = vadd.f32 %v64_v58, %v63_v52 }
  0x9c   :  { %v80_v44 = vrot.slane %v79_v39, 2 }
  0x9e   :  { %v81_v50 = vadd.f32 %v80_v44, %v79_v39 }
  0xa0   :  { %v82_v57 = vrot.slane %v81_v50, 1 }
  0xa2   :  { %v83_v61 = vadd.f32 %v82_v57, %v81_v50 }
  0xbb   :  { %v36_v41 = vpop.xlane.xlu0 %35 }
  0xbc   :  { %v37_v42 = vrot.slane %v36_v41, 4 }
  0xbe   :  { %v38_v43 = vadd.f32 %v37_v42, %v36_v41 }
  0xbf   :  { %v48_v46 = vpop.xlane.xlu0 %47 }
  0xc0   :  { %v39_v47 = vrot.slane %v38_v43, 2  ;;  %v49_v48 = vrot.slane %v48_v46, 4 }
  0xc2   :  { %v50_v49 = vadd.f32 %v49_v48, %v48_v46  ;;  %v40_v51 = vadd.f32 %v39_v47, %v38_v43 }
  0xc4   :  { %v51_v53 = vrot.slane %v50_v49, 2  ;;  %v41_v54 = vrot.slane %v40_v51, 1 }
  0xc6   :  { %v52_v55 = vadd.f32 %v51_v53, %v50_v49  ;;  %v42_v56 = vadd.f32 %v41_v54, %v40_v51 }
  0xc8   :  { %106 = vpush %v42_v56  ;;  %v53_v59 = vrot.slane %v52_v55, 1 }
  0xca   :  { %v54_v60 = vadd.f32 %v53_v59, %v52_v55 }
  0xcc   :  { %108 = vpush %v54_v60 }
  0xcd   :  { %110 = vpush %v65_v62 }
  0xce   :  { %112 = vpush %v83_v61 }
  0xf9   :  { %s107_s0 = spop %106 }
  0xfa   :  { %v44_v10 = vstv %s107_s0 }
  0xfd   :  { %s109_s22 = spop %108 }
  0xfe   :  { %s111_s23 = spop %110  ;;  %v56_v2 = vstv %s109_s22 }
  0xff   :  { %v67_v63 = vstv %s111_s23  ;;  %s113_s24 = spop %112  ;;  %v89_v5 = vmul.f32 0.5, %v56_v2 }
 0x100   :  { %v86_v0 = vadd.f32 0.0001, %v67_v63  ;;  %v85_v3 = vstv %s113_s24 }
 0x101   :  { %v91_v6 = vmul.f32 0.2, %v85_v3 }
 0x102   :  { %119 = vrcp.f32 %v86_v0 }
 0x10c   :  { %v120_v7 = vpop.eup %119 }
 0x10d   :  { %v90_v8 = vmul.f32 %v120_v7, %v89_v5  ;;  %v92_v9 = vmul.f32 %v120_v7, %v91_v6  ;;  %v88_v12 = vmul.f32 %v120_v7, %v44_v10 }
 0x10f   :  { %v93_v11 = vadd.f32 %v92_v9, %v90_v8 }
 0x111   :  { %v98_v13 = vsel %vm97_vm3, %v93_v11, 0.0 }
 0x112   :  { %v99_v14 = vsel %vm96_vm4, %v88_v12, %v98_v13 }
 0x113   :  { %100 = vst [vmem:[%s164_s1] sm:$0x1] %v99_v14 }

</bundles_post_ra>
